<compile_context>
chip_gen: v7x
topology: tpu7x:2x2x1
jax: 0.10.0
libtpu: 0.0.40
codegen_flags: <defaults>
</compile_context>

<pallas_src>
import functools

import jax
import jax.numpy as jnp
from jax import lax
from jax.experimental import pallas as pl
from jax.experimental.pallas import tpu as pltpu


def mha_kernel(x_ref, wqkv_ref, wo_h_ref, bo_ref, o_ref,
               *, num_heads, head_dim, d_out):
    # x_ref:    (block_b, T, d_in)
    # wqkv_ref: (d_in, 3*d_out)      -- [Wq*scale | Wk | Wv]
    # wo_h_ref: (num_heads, head_dim, d_out)
    # bo_ref:   (1, d_out)
    # o_ref:    (block_b, T, d_out)
    block_b, T, d_in = x_ref.shape

    # Fused QKV projection over the flattened (block_b*T, d_in) slab:
    # one MXU push with N = 3*d_out instead of three N = d_out pushes.
    x2 = x_ref[...].reshape(block_b * T, d_in)
    qkv = jnp.dot(x2, wqkv_ref[...], preferred_element_type=jnp.float32)

    # Causal mask, hoisted: shared across all batches and heads in this step.
    row = lax.broadcasted_iota(jnp.int32, (T, T), 0)
    col = lax.broadcasted_iota(jnp.int32, (T, T), 1)
    causal_ok = col <= row
    neg_big = jnp.float32(-1e30)          # finite => no NaN for fully-masked rows

    wo_all = wo_h_ref[...]                # (H, hd, d_out), loaded once
    bias = bo_ref[...]                    # (1, d_out), broadcasts over T rows

    for b in range(block_b):              # static, small trip count
        r0 = b * T
        out_acc = jnp.zeros((T, d_out), jnp.float32)
        for h in range(num_heads):        # static, small trip count
            c0 = h * head_dim
            qh = qkv[r0:r0 + T, c0:c0 + head_dim]                    # scale already in Wq
            kh = qkv[r0:r0 + T, d_out + c0:d_out + c0 + head_dim]
            vh = qkv[r0:r0 + T, 2 * d_out + c0:2 * d_out + c0 + head_dim]

            # q @ k^T without materializing a transpose of k.
            s = lax.dot_general(qh, kh, (((1,), (1,)), ((), ())),
                                preferred_element_type=jnp.float32)  # (T, T)
            s = jnp.where(causal_ok, s, neg_big)

            # Numerically-stable softmax; reciprocal on the EUP slot.
            m = jnp.max(s, axis=-1, keepdims=True)
            p = jnp.exp(s - m)
            denom = jnp.sum(p, axis=-1, keepdims=True)
            attn = p * pl.reciprocal(denom, approx=True)             # (T, T)

            # attention-probs @ V, f32 accumulation on the MXU.
            ctx_h = jnp.dot(attn, vh,
                            preferred_element_type=jnp.float32)      # (T, head_dim)

            # out = concat_h(ctx_h) @ Wo == sum_h ctx_h @ Wo[h]  -> no concatenate.
            out_acc = out_acc + jnp.dot(ctx_h, wo_all[h],
                                        preferred_element_type=jnp.float32)

        o_ref[b] = (out_acc + bias).astype(o_ref.dtype)


def _pick_batch_block(B, T):
    """Largest divisor of B such that block_b*T is roughly >= 128 (MXU M dim)."""
    target = min(B, max(1, 128 // max(T, 1)))
    bb = target
    while B % bb:
        bb -= 1
    return bb


def multi_head_attention(x, wq, wk, wv, wo, bo, *, num_heads, block_b=None):
    B, T, d_in = x.shape
    d_out = wq.shape[1]
    head_dim = d_out // num_heads
    scale = 1.0 / (head_dim ** 0.5)

    # Wrapper-side layout plumbing (runs once under jit, not per grid step):
    #  * fuse QKV and fold the softmax scale into the Wq columns,
    #  * split Wo per head so the kernel can accumulate the output projection.
    w_qkv = jnp.concatenate([wq * scale, wk, wv], axis=1)     # (d_in, 3*d_out)
    wo_h = wo.reshape(num_heads, head_dim, d_out)             # (H, hd, d_out)

    if block_b is None:
        block_b = _pick_batch_block(B, T)
    assert B % block_b == 0
    grid = (B // block_b,)

    kernel = functools.partial(mha_kernel, num_heads=num_heads,
                               head_dim=head_dim, d_out=d_out)

    return pl.pallas_call(
        kernel,
        out_shape=jax.ShapeDtypeStruct((B, T, d_out), x.dtype),
        grid_spec=pltpu.PrefetchScalarGridSpec(
            num_scalar_prefetch=0,
            grid=grid,
            in_specs=[
                pl.BlockSpec((block_b, T, d_in), lambda b: (b, 0, 0)),
                pl.BlockSpec((d_in, 3 * d_out), lambda b: (0, 0)),
                pl.BlockSpec((num_heads, head_dim, d_out), lambda b: (0, 0, 0)),
                pl.BlockSpec((1, d_out), lambda b: (0, 0)),
            ],
            out_specs=pl.BlockSpec((block_b, T, d_out), lambda b: (b, 0, 0)),
        ),
        compiler_params=pltpu.CompilerParams(
            dimension_semantics=("parallel",)),
    )(x, w_qkv, wo_h, bo)


def reference(x, wq, wk, wv, wo, bo, *, num_heads):
    """Pure-JAX f32 reference mirroring the PyTorch forward (dropout p=0)."""
    B, T, d_in = x.shape
    d_out = wq.shape[1]
    hd = d_out // num_heads
    q = x @ wq
    k = x @ wk
    v = x @ wv
    q = q.reshape(B, T, num_heads, hd).transpose(0, 2, 1, 3)
    k = k.reshape(B, T, num_heads, hd).transpose(0, 2, 1, 3)
    v = v.reshape(B, T, num_heads, hd).transpose(0, 2, 1, 3)
    scores = jnp.einsum("bhqd,bhkd->bhqk", q, k)
    mask = jnp.triu(jnp.ones((T, T), dtype=bool), k=1)
    scores = jnp.where(mask[None, None], -jnp.inf, scores)
    w = jax.nn.softmax(scores / (hd ** 0.5), axis=-1)
    ctx = jnp.einsum("bhqk,bhkd->bhqd", w, v).transpose(0, 2, 1, 3).reshape(B, T, d_out)
    return ctx @ wo + bo[0]


if __name__ == "__main__":
    # Small shapes consistent with the module's forward.
    B, T = 2, 8            # batch, num_tokens (= context_length)
    d_in, d_out = 32, 32
    num_heads = 4          # head_dim = 8
    # dropout = 0.0 (identity)

    key = jax.random.PRNGKey(0)
    kx, kq, kk, kv, ko, kb = jax.random.split(key, 6)
    x = jax.random.normal(kx, (B, T, d_in), dtype=jnp.float32)
    wq = jax.random.normal(kq, (d_in, d_out), dtype=jnp.float32) * 0.1
    wk = jax.random.normal(kk, (d_in, d_out), dtype=jnp.float32) * 0.1
    wv = jax.random.normal(kv, (d_in, d_out), dtype=jnp.float32) * 0.1
    wo = jax.random.normal(ko, (d_out, d_out), dtype=jnp.float32) * 0.1
    bo = jax.random.normal(kb, (1, d_out), dtype=jnp.float32) * 0.1

    out = multi_head_attention(x, wq, wk, wv, wo, bo, num_heads=num_heads)
    out = jax.block_until_ready(out)

    ref = reference(x, wq, wk, wv, wo, bo, num_heads=num_heads)
    assert out.shape == (B, T, d_out)
    # Tolerance accounts for the approximate (EUP) reciprocal in the softmax.
    assert jnp.allclose(out, ref, atol=1e-2, rtol=1e-2), "mismatch vs reference"

    print("KERNEL_OK")
</pallas_src>

<mosaic_0001>
module attributes {stable_mosaic.version = 11 : i64} {
  func.func @mha_kernel(%arg0: i32, %arg1: memref<2x8x32xf32, #tpu.memory_space<vmem>>, %arg2: memref<32x96xf32, #tpu.memory_space<vmem>>, %arg3: memref<4x8x32xf32, #tpu.memory_space<vmem>>, %arg4: memref<1x32xf32, #tpu.memory_space<vmem>>, %arg5: memref<2x8x32xf32, #tpu.memory_space<vmem>>) attributes {dimension_semantics = [#tpu.dimension_semantics<parallel>], iteration_bounds = array<i64: 1>, scalar_prefetch = 0 : i64, scratch_operands = 0 : i64, tpu.core_type = #tpu.core_type<tc>, window_params = [{transform_indices = @transform_0, window_bounds = array<i64: 2, 8, 32>}, {pipeline_mode = #tpu.pipeline_mode<synchronous>, transform_indices = @transform_1, window_bounds = array<i64: 32, 96>}, {pipeline_mode = #tpu.pipeline_mode<synchronous>, transform_indices = @transform_2, window_bounds = array<i64: 4, 8, 32>}, {pipeline_mode = #tpu.pipeline_mode<synchronous>, transform_indices = @transform_3, window_bounds = array<i64: 1, 32>}, {transform_indices = @transform_4, window_bounds = array<i64: 2, 8, 32>}]} {
    %c0 = arith.constant 0 : index
    %c0_0 = arith.constant 0 : index
    %c0_1 = arith.constant 0 : index
    %0 = vector.load %arg1[%c0, %c0_0, %c0_1] : memref<2x8x32xf32, #tpu.memory_space<vmem>>, vector<2x8x32xf32>
    %1 = vector.shape_cast %0 : vector<2x8x32xf32> to vector<16x32xf32>
    %c0_2 = arith.constant 0 : index
    %c0_3 = arith.constant 0 : index
    %2 = vector.load %arg2[%c0_2, %c0_3] : memref<32x96xf32, #tpu.memory_space<vmem>>, vector<32x96xf32>
    %cst = arith.constant dense<0.000000e+00> : vector<16x96xf32>
    %3 = tpu.matmul %1, %2, %cst {dimension_numbers = #tpu.dot_dimension_numbers<[1], [0], [0], [1], [0, 0, 1, 1], [], []>} : vector<16x32xf32>, vector<32x96xf32>, vector<16x96xf32> -> vector<16x96xf32>
    %4 = tpu.iota {dimensions = array<i32: 0>} : vector<8x8xi32>
    %5 = tpu.iota {dimensions = array<i32: 1>} : vector<8x8xi32>
    %6 = arith.cmpi sle, %5, %4 : vector<8x8xi32>
    %c0_4 = arith.constant 0 : index
    %c0_5 = arith.constant 0 : index
    %c0_6 = arith.constant 0 : index
    %7 = vector.load %arg3[%c0_4, %c0_5, %c0_6] : memref<4x8x32xf32, #tpu.memory_space<vmem>>, vector<4x8x32xf32>
    %c0_7 = arith.constant 0 : index
    %c0_8 = arith.constant 0 : index
    %8 = vector.load %arg4[%c0_7, %c0_8] : memref<1x32xf32, #tpu.memory_space<vmem>>, vector<1x32xf32>
    %cst_9 = arith.constant 0.000000e+00 : f32
    %9 = vector.broadcast %cst_9 : f32 to vector<8x32xf32>
    %10 = vector.extract_strided_slice %3 {offsets = [0, 0], sizes = [8, 8], strides = [1, 1]} : vector<16x96xf32> to vector<8x8xf32>
    %11 = vector.extract_strided_slice %3 {offsets = [0, 32], sizes = [8, 8], strides = [1, 1]} : vector<16x96xf32> to vector<8x8xf32>
    %12 = vector.extract_strided_slice %3 {offsets = [0, 64], sizes = [8, 8], strides = [1, 1]} : vector<16x96xf32> to vector<8x8xf32>
    %cst_10 = arith.constant dense<0.000000e+00> : vector<8x8xf32>
    %13 = tpu.matmul %10, %11, %cst_10 {dimension_numbers = #tpu.dot_dimension_numbers<[1], [1], [0], [0], [0, 0, 1, 0], [], []>} : vector<8x8xf32>, vector<8x8xf32>, vector<8x8xf32> -> vector<8x8xf32>
    %cst_11 = arith.constant -1.000000e+30 : f32
    %14 = vector.broadcast %cst_11 : f32 to vector<8x8xf32>
    %15 = arith.select %6, %13, %14 : vector<8x8xi1>, vector<8x8xf32>
    %cst_12 = arith.constant dense<0xFF800000> : vector<8xf32>
    %16 = vector.multi_reduction <maximumf>, %15, %cst_12 [1] : vector<8x8xf32> to vector<8xf32>
    %17 = vector.shape_cast %16 : vector<8xf32> to vector<8x1xf32>
    %18 = vector.broadcast %17 : vector<8x1xf32> to vector<8x8xf32>
    %19 = arith.subf %15, %18 : vector<8x8xf32>
    %20 = math.exp %19 : vector<8x8xf32>
    %cst_13 = arith.constant dense<0.000000e+00> : vector<8xf32>
    %21 = vector.multi_reduction <add>, %20, %cst_13 [1] : vector<8x8xf32> to vector<8xf32>
    %22 = vector.shape_cast %21 : vector<8xf32> to vector<8x1xf32>
    %23 = tpu.reciprocal %22 {approx = true} : vector<8x1xf32> -> vector<8x1xf32>
    %24 = vector.broadcast %23 : vector<8x1xf32> to vector<8x8xf32>
    %25 = arith.mulf %20, %24 : vector<8x8xf32>
    %cst_14 = arith.constant dense<0.000000e+00> : vector<8x8xf32>
    %26 = tpu.matmul %25, %12, %cst_14 {dimension_numbers = #tpu.dot_dimension_numbers<[1], [0], [0], [1], [0, 0, 1, 1], [], []>} : vector<8x8xf32>, vector<8x8xf32>, vector<8x8xf32> -> vector<8x8xf32>
    %27 = vector.extract_strided_slice %7 {offsets = [0, 0, 0], sizes = [1, 8, 32], strides = [1, 1, 1]} : vector<4x8x32xf32> to vector<1x8x32xf32>
    %28 = vector.shape_cast %27 : vector<1x8x32xf32> to vector<8x32xf32>
    %cst_15 = arith.constant dense<0.000000e+00> : vector<8x32xf32>
    %29 = tpu.matmul %26, %28, %cst_15 {dimension_numbers = #tpu.dot_dimension_numbers<[1], [0], [0], [1], [0, 0, 1, 1], [], []>} : vector<8x8xf32>, vector<8x32xf32>, vector<8x32xf32> -> vector<8x32xf32>
    %30 = arith.addf %9, %29 : vector<8x32xf32>
    %31 = vector.extract_strided_slice %3 {offsets = [0, 8], sizes = [8, 8], strides = [1, 1]} : vector<16x96xf32> to vector<8x8xf32>
    %32 = vector.extract_strided_slice %3 {offsets = [0, 40], sizes = [8, 8], strides = [1, 1]} : vector<16x96xf32> to vector<8x8xf32>
    %33 = vector.extract_strided_slice %3 {offsets = [0, 72], sizes = [8, 8], strides = [1, 1]} : vector<16x96xf32> to vector<8x8xf32>
    %cst_16 = arith.constant dense<0.000000e+00> : vector<8x8xf32>
    %34 = tpu.matmul %31, %32, %cst_16 {dimension_numbers = #tpu.dot_dimension_numbers<[1], [1], [0], [0], [0, 0, 1, 0], [], []>} : vector<8x8xf32>, vector<8x8xf32>, vector<8x8xf32> -> vector<8x8xf32>
    %cst_17 = arith.constant -1.000000e+30 : f32
    %35 = vector.broadcast %cst_17 : f32 to vector<8x8xf32>
    %36 = arith.select %6, %34, %35 : vector<8x8xi1>, vector<8x8xf32>
    %cst_18 = arith.constant dense<0xFF800000> : vector<8xf32>
    %37 = vector.multi_reduction <maximumf>, %36, %cst_18 [1] : vector<8x8xf32> to vector<8xf32>
    %38 = vector.shape_cast %37 : vector<8xf32> to vector<8x1xf32>
    %39 = vector.broadcast %38 : vector<8x1xf32> to vector<8x8xf32>
    %40 = arith.subf %36, %39 : vector<8x8xf32>
    %41 = math.exp %40 : vector<8x8xf32>
    %cst_19 = arith.constant dense<0.000000e+00> : vector<8xf32>
    %42 = vector.multi_reduction <add>, %41, %cst_19 [1] : vector<8x8xf32> to vector<8xf32>
    %43 = vector.shape_cast %42 : vector<8xf32> to vector<8x1xf32>
    %44 = tpu.reciprocal %43 {approx = true} : vector<8x1xf32> -> vector<8x1xf32>
    %45 = vector.broadcast %44 : vector<8x1xf32> to vector<8x8xf32>
    %46 = arith.mulf %41, %45 : vector<8x8xf32>
    %cst_20 = arith.constant dense<0.000000e+00> : vector<8x8xf32>
    %47 = tpu.matmul %46, %33, %cst_20 {dimension_numbers = #tpu.dot_dimension_numbers<[1], [0], [0], [1], [0, 0, 1, 1], [], []>} : vector<8x8xf32>, vector<8x8xf32>, vector<8x8xf32> -> vector<8x8xf32>
    %48 = vector.extract_strided_slice %7 {offsets = [1, 0, 0], sizes = [1, 8, 32], strides = [1, 1, 1]} : vector<4x8x32xf32> to vector<1x8x32xf32>
    %49 = vector.shape_cast %48 : vector<1x8x32xf32> to vector<8x32xf32>
    %cst_21 = arith.constant dense<0.000000e+00> : vector<8x32xf32>
    %50 = tpu.matmul %47, %49, %cst_21 {dimension_numbers = #tpu.dot_dimension_numbers<[1], [0], [0], [1], [0, 0, 1, 1], [], []>} : vector<8x8xf32>, vector<8x32xf32>, vector<8x32xf32> -> vector<8x32xf32>
    %51 = arith.addf %30, %50 : vector<8x32xf32>
    %52 = vector.extract_strided_slice %3 {offsets = [0, 16], sizes = [8, 8], strides = [1, 1]} : vector<16x96xf32> to vector<8x8xf32>
    %53 = vector.extract_strided_slice %3 {offsets = [0, 48], sizes = [8, 8], strides = [1, 1]} : vector<16x96xf32> to vector<8x8xf32>
    %54 = vector.extract_strided_slice %3 {offsets = [0, 80], sizes = [8, 8], strides = [1, 1]} : vector<16x96xf32> to vector<8x8xf32>
    %cst_22 = arith.constant dense<0.000000e+00> : vector<8x8xf32>
    %55 = tpu.matmul %52, %53, %cst_22 {dimension_numbers = #tpu.dot_dimension_numbers<[1], [1], [0], [0], [0, 0, 1, 0], [], []>} : vector<8x8xf32>, vector<8x8xf32>, vector<8x8xf32> -> vector<8x8xf32>
    %cst_23 = arith.constant -1.000000e+30 : f32
    %56 = vector.broadcast %cst_23 : f32 to vector<8x8xf32>
    %57 = arith.select %6, %55, %56 : vector<8x8xi1>, vector<8x8xf32>
    %cst_24 = arith.constant dense<0xFF800000> : vector<8xf32>
    %58 = vector.multi_reduction <maximumf>, %57, %cst_24 [1] : vector<8x8xf32> to vector<8xf32>
    %59 = vector.shape_cast %58 : vector<8xf32> to vector<8x1xf32>
    %60 = vector.broadcast %59 : vector<8x1xf32> to vector<8x8xf32>
    %61 = arith.subf %57, %60 : vector<8x8xf32>
    %62 = math.exp %61 : vector<8x8xf32>
    %cst_25 = arith.constant dense<0.000000e+00> : vector<8xf32>
    %63 = vector.multi_reduction <add>, %62, %cst_25 [1] : vector<8x8xf32> to vector<8xf32>
    %64 = vector.shape_cast %63 : vector<8xf32> to vector<8x1xf32>
    %65 = tpu.reciprocal %64 {approx = true} : vector<8x1xf32> -> vector<8x1xf32>
    %66 = vector.broadcast %65 : vector<8x1xf32> to vector<8x8xf32>
    %67 = arith.mulf %62, %66 : vector<8x8xf32>
    %cst_26 = arith.constant dense<0.000000e+00> : vector<8x8xf32>
    %68 = tpu.matmul %67, %54, %cst_26 {dimension_numbers = #tpu.dot_dimension_numbers<[1], [0], [0], [1], [0, 0, 1, 1], [], []>} : vector<8x8xf32>, vector<8x8xf32>, vector<8x8xf32> -> vector<8x8xf32>
    %69 = vector.extract_strided_slice %7 {offsets = [2, 0, 0], sizes = [1, 8, 32], strides = [1, 1, 1]} : vector<4x8x32xf32> to vector<1x8x32xf32>
    %70 = vector.shape_cast %69 : vector<1x8x32xf32> to vector<8x32xf32>
    %cst_27 = arith.constant dense<0.000000e+00> : vector<8x32xf32>
    %71 = tpu.matmul %68, %70, %cst_27 {dimension_numbers = #tpu.dot_dimension_numbers<[1], [0], [0], [1], [0, 0, 1, 1], [], []>} : vector<8x8xf32>, vector<8x32xf32>, vector<8x32xf32> -> vector<8x32xf32>
    %72 = arith.addf %51, %71 : vector<8x32xf32>
    %73 = vector.extract_strided_slice %3 {offsets = [0, 24], sizes = [8, 8], strides = [1, 1]} : vector<16x96xf32> to vector<8x8xf32>
    %74 = vector.extract_strided_slice %3 {offsets = [0, 56], sizes = [8, 8], strides = [1, 1]} : vector<16x96xf32> to vector<8x8xf32>
    %75 = vector.extract_strided_slice %3 {offsets = [0, 88], sizes = [8, 8], strides = [1, 1]} : vector<16x96xf32> to vector<8x8xf32>
    %cst_28 = arith.constant dense<0.000000e+00> : vector<8x8xf32>
    %76 = tpu.matmul %73, %74, %cst_28 {dimension_numbers = #tpu.dot_dimension_numbers<[1], [1], [0], [0], [0, 0, 1, 0], [], []>} : vector<8x8xf32>, vector<8x8xf32>, vector<8x8xf32> -> vector<8x8xf32>
    %cst_29 = arith.constant -1.000000e+30 : f32
    %77 = vector.broadcast %cst_29 : f32 to vector<8x8xf32>
    %78 = arith.select %6, %76, %77 : vector<8x8xi1>, vector<8x8xf32>
    %cst_30 = arith.constant dense<0xFF800000> : vector<8xf32>
    %79 = vector.multi_reduction <maximumf>, %78, %cst_30 [1] : vector<8x8xf32> to vector<8xf32>
    %80 = vector.shape_cast %79 : vector<8xf32> to vector<8x1xf32>
    %81 = vector.broadcast %80 : vector<8x1xf32> to vector<8x8xf32>
    %82 = arith.subf %78, %81 : vector<8x8xf32>
    %83 = math.exp %82 : vector<8x8xf32>
    %cst_31 = arith.constant dense<0.000000e+00> : vector<8xf32>
    %84 = vector.multi_reduction <add>, %83, %cst_31 [1] : vector<8x8xf32> to vector<8xf32>
    %85 = vector.shape_cast %84 : vector<8xf32> to vector<8x1xf32>
    %86 = tpu.reciprocal %85 {approx = true} : vector<8x1xf32> -> vector<8x1xf32>
    %87 = vector.broadcast %86 : vector<8x1xf32> to vector<8x8xf32>
    %88 = arith.mulf %83, %87 : vector<8x8xf32>
    %cst_32 = arith.constant dense<0.000000e+00> : vector<8x8xf32>
    %89 = tpu.matmul %88, %75, %cst_32 {dimension_numbers = #tpu.dot_dimension_numbers<[1], [0], [0], [1], [0, 0, 1, 1], [], []>} : vector<8x8xf32>, vector<8x8xf32>, vector<8x8xf32> -> vector<8x8xf32>
    %90 = vector.extract_strided_slice %7 {offsets = [3, 0, 0], sizes = [1, 8, 32], strides = [1, 1, 1]} : vector<4x8x32xf32> to vector<1x8x32xf32>
    %91 = vector.shape_cast %90 : vector<1x8x32xf32> to vector<8x32xf32>
    %cst_33 = arith.constant dense<0.000000e+00> : vector<8x32xf32>
    %92 = tpu.matmul %89, %91, %cst_33 {dimension_numbers = #tpu.dot_dimension_numbers<[1], [0], [0], [1], [0, 0, 1, 1], [], []>} : vector<8x8xf32>, vector<8x32xf32>, vector<8x32xf32> -> vector<8x32xf32>
    %93 = arith.addf %72, %92 : vector<8x32xf32>
    %94 = vector.broadcast %8 : vector<1x32xf32> to vector<8x32xf32>
    %95 = arith.addf %93, %94 : vector<8x32xf32>
    %c0_34 = arith.constant 0 : index
    %c0_35 = arith.constant 0 : index
    %c0_36 = arith.constant 0 : index
    %96 = vector.load %arg5[%c0_34, %c0_35, %c0_36] : memref<2x8x32xf32, #tpu.memory_space<vmem>>, vector<1x8x32xf32>
    %97 = vector.shape_cast %96 : vector<1x8x32xf32> to vector<8x32xf32>
    %98 = vector.shape_cast %95 : vector<8x32xf32> to vector<1x8x32xf32>
    tpu.vector_store %arg5[%c0_34, %c0_35, %c0_36], %98 {strides = array<i32>} : memref<2x8x32xf32, #tpu.memory_space<vmem>>, vector<1x8x32xf32>,
    %cst_37 = arith.constant 0.000000e+00 : f32
    %99 = vector.broadcast %cst_37 : f32 to vector<8x32xf32>
    %100 = vector.extract_strided_slice %3 {offsets = [8, 0], sizes = [8, 8], strides = [1, 1]} : vector<16x96xf32> to vector<8x8xf32>
    %101 = vector.extract_strided_slice %3 {offsets = [8, 32], sizes = [8, 8], strides = [1, 1]} : vector<16x96xf32> to vector<8x8xf32>
    %102 = vector.extract_strided_slice %3 {offsets = [8, 64], sizes = [8, 8], strides = [1, 1]} : vector<16x96xf32> to vector<8x8xf32>
    %cst_38 = arith.constant dense<0.000000e+00> : vector<8x8xf32>
    %103 = tpu.matmul %100, %101, %cst_38 {dimension_numbers = #tpu.dot_dimension_numbers<[1], [1], [0], [0], [0, 0, 1, 0], [], []>} : vector<8x8xf32>, vector<8x8xf32>, vector<8x8xf32> -> vector<8x8xf32>
    %cst_39 = arith.constant -1.000000e+30 : f32
    %104 = vector.broadcast %cst_39 : f32 to vector<8x8xf32>
    %105 = arith.select %6, %103, %104 : vector<8x8xi1>, vector<8x8xf32>
    %cst_40 = arith.constant dense<0xFF800000> : vector<8xf32>
    %106 = vector.multi_reduction <maximumf>, %105, %cst_40 [1] : vector<8x8xf32> to vector<8xf32>
    %107 = vector.shape_cast %106 : vector<8xf32> to vector<8x1xf32>
    %108 = vector.broadcast %107 : vector<8x1xf32> to vector<8x8xf32>
    %109 = arith.subf %105, %108 : vector<8x8xf32>
    %110 = math.exp %109 : vector<8x8xf32>
    %cst_41 = arith.constant dense<0.000000e+00> : vector<8xf32>
    %111 = vector.multi_reduction <add>, %110, %cst_41 [1] : vector<8x8xf32> to vector<8xf32>
    %112 = vector.shape_cast %111 : vector<8xf32> to vector<8x1xf32>
    %113 = tpu.reciprocal %112 {approx = true} : vector<8x1xf32> -> vector<8x1xf32>
    %114 = vector.broadcast %113 : vector<8x1xf32> to vector<8x8xf32>
    %115 = arith.mulf %110, %114 : vector<8x8xf32>
    %cst_42 = arith.constant dense<0.000000e+00> : vector<8x8xf32>
    %116 = tpu.matmul %115, %102, %cst_42 {dimension_numbers = #tpu.dot_dimension_numbers<[1], [0], [0], [1], [0, 0, 1, 1], [], []>} : vector<8x8xf32>, vector<8x8xf32>, vector<8x8xf32> -> vector<8x8xf32>
    %117 = vector.extract_strided_slice %7 {offsets = [0, 0, 0], sizes = [1, 8, 32], strides = [1, 1, 1]} : vector<4x8x32xf32> to vector<1x8x32xf32>
    %118 = vector.shape_cast %117 : vector<1x8x32xf32> to vector<8x32xf32>
    %cst_43 = arith.constant dense<0.000000e+00> : vector<8x32xf32>
    %119 = tpu.matmul %116, %118, %cst_43 {dimension_numbers = #tpu.dot_dimension_numbers<[1], [0], [0], [1], [0, 0, 1, 1], [], []>} : vector<8x8xf32>, vector<8x32xf32>, vector<8x32xf32> -> vector<8x32xf32>
    %120 = arith.addf %99, %119 : vector<8x32xf32>
    %121 = vector.extract_strided_slice %3 {offsets = [8, 8], sizes = [8, 8], strides = [1, 1]} : vector<16x96xf32> to vector<8x8xf32>
    %122 = vector.extract_strided_slice %3 {offsets = [8, 40], sizes = [8, 8], strides = [1, 1]} : vector<16x96xf32> to vector<8x8xf32>
    %123 = vector.extract_strided_slice %3 {offsets = [8, 72], sizes = [8, 8], strides = [1, 1]} : vector<16x96xf32> to vector<8x8xf32>
    %cst_44 = arith.constant dense<0.000000e+00> : vector<8x8xf32>
    %124 = tpu.matmul %121, %122, %cst_44 {dimension_numbers = #tpu.dot_dimension_numbers<[1], [1], [0], [0], [0, 0, 1, 0], [], []>} : vector<8x8xf32>, vector<8x8xf32>, vector<8x8xf32> -> vector<8x8xf32>
    %cst_45 = arith.constant -1.000000e+30 : f32
    %125 = vector.broadcast %cst_45 : f32 to vector<8x8xf32>
    %126 = arith.select %6, %124, %125 : vector<8x8xi1>, vector<8x8xf32>
    %cst_46 = arith.constant dense<0xFF800000> : vector<8xf32>
    %127 = vector.multi_reduction <maximumf>, %126, %cst_46 [1] : vector<8x8xf32> to vector<8xf32>
    %128 = vector.shape_cast %127 : vector<8xf32> to vector<8x1xf32>
    %129 = vector.broadcast %128 : vector<8x1xf32> to vector<8x8xf32>
    %130 = arith.subf %126, %129 : vector<8x8xf32>
    %131 = math.exp %130 : vector<8x8xf32>
    %cst_47 = arith.constant dense<0.000000e+00> : vector<8xf32>
    %132 = vector.multi_reduction <add>, %131, %cst_47 [1] : vector<8x8xf32> to vector<8xf32>
    %133 = vector.shape_cast %132 : vector<8xf32> to vector<8x1xf32>
    %134 = tpu.reciprocal %133 {approx = true} : vector<8x1xf32> -> vector<8x1xf32>
    %135 = vector.broadcast %134 : vector<8x1xf32> to vector<8x8xf32>
    %136 = arith.mulf %131, %135 : vector<8x8xf32>
    %cst_48 = arith.constant dense<0.000000e+00> : vector<8x8xf32>
    %137 = tpu.matmul %136, %123, %cst_48 {dimension_numbers = #tpu.dot_dimension_numbers<[1], [0], [0], [1], [0, 0, 1, 1], [], []>} : vector<8x8xf32>, vector<8x8xf32>, vector<8x8xf32> -> vector<8x8xf32>
    %138 = vector.extract_strided_slice %7 {offsets = [1, 0, 0], sizes = [1, 8, 32], strides = [1, 1, 1]} : vector<4x8x32xf32> to vector<1x8x32xf32>
    %139 = vector.shape_cast %138 : vector<1x8x32xf32> to vector<8x32xf32>
    %cst_49 = arith.constant dense<0.000000e+00> : vector<8x32xf32>
    %140 = tpu.matmul %137, %139, %cst_49 {dimension_numbers = #tpu.dot_dimension_numbers<[1], [0], [0], [1], [0, 0, 1, 1], [], []>} : vector<8x8xf32>, vector<8x32xf32>, vector<8x32xf32> -> vector<8x32xf32>
    %141 = arith.addf %120, %140 : vector<8x32xf32>
    %142 = vector.extract_strided_slice %3 {offsets = [8, 16], sizes = [8, 8], strides = [1, 1]} : vector<16x96xf32> to vector<8x8xf32>
    %143 = vector.extract_strided_slice %3 {offsets = [8, 48], sizes = [8, 8], strides = [1, 1]} : vector<16x96xf32> to vector<8x8xf32>
    %144 = vector.extract_strided_slice %3 {offsets = [8, 80], sizes = [8, 8], strides = [1, 1]} : vector<16x96xf32> to vector<8x8xf32>
    %cst_50 = arith.constant dense<0.000000e+00> : vector<8x8xf32>
    %145 = tpu.matmul %142, %143, %cst_50 {dimension_numbers = #tpu.dot_dimension_numbers<[1], [1], [0], [0], [0, 0, 1, 0], [], []>} : vector<8x8xf32>, vector<8x8xf32>, vector<8x8xf32> -> vector<8x8xf32>
    %cst_51 = arith.constant -1.000000e+30 : f32
    %146 = vector.broadcast %cst_51 : f32 to vector<8x8xf32>
    %147 = arith.select %6, %145, %146 : vector<8x8xi1>, vector<8x8xf32>
    %cst_52 = arith.constant dense<0xFF800000> : vector<8xf32>
    %148 = vector.multi_reduction <maximumf>, %147, %cst_52 [1] : vector<8x8xf32> to vector<8xf32>
    %149 = vector.shape_cast %148 : vector<8xf32> to vector<8x1xf32>
    %150 = vector.broadcast %149 : vector<8x1xf32> to vector<8x8xf32>
    %151 = arith.subf %147, %150 : vector<8x8xf32>
    %152 = math.exp %151 : vector<8x8xf32>
    %cst_53 = arith.constant dense<0.000000e+00> : vector<8xf32>
    %153 = vector.multi_reduction <add>, %152, %cst_53 [1] : vector<8x8xf32> to vector<8xf32>
    %154 = vector.shape_cast %153 : vector<8xf32> to vector<8x1xf32>
    %155 = tpu.reciprocal %154 {approx = true} : vector<8x1xf32> -> vector<8x1xf32>
    %156 = vector.broadcast %155 : vector<8x1xf32> to vector<8x8xf32>
    %157 = arith.mulf %152, %156 : vector<8x8xf32>
    %cst_54 = arith.constant dense<0.000000e+00> : vector<8x8xf32>
    %158 = tpu.matmul %157, %144, %cst_54 {dimension_numbers = #tpu.dot_dimension_numbers<[1], [0], [0], [1], [0, 0, 1, 1], [], []>} : vector<8x8xf32>, vector<8x8xf32>, vector<8x8xf32> -> vector<8x8xf32>
    %159 = vector.extract_strided_slice %7 {offsets = [2, 0, 0], sizes = [1, 8, 32], strides = [1, 1, 1]} : vector<4x8x32xf32> to vector<1x8x32xf32>
    %160 = vector.shape_cast %159 : vector<1x8x32xf32> to vector<8x32xf32>
    %cst_55 = arith.constant dense<0.000000e+00> : vector<8x32xf32>
    %161 = tpu.matmul %158, %160, %cst_55 {dimension_numbers = #tpu.dot_dimension_numbers<[1], [0], [0], [1], [0, 0, 1, 1], [], []>} : vector<8x8xf32>, vector<8x32xf32>, vector<8x32xf32> -> vector<8x32xf32>
    %162 = arith.addf %141, %161 : vector<8x32xf32>
    %163 = vector.extract_strided_slice %3 {offsets = [8, 24], sizes = [8, 8], strides = [1, 1]} : vector<16x96xf32> to vector<8x8xf32>
    %164 = vector.extract_strided_slice %3 {offsets = [8, 56], sizes = [8, 8], strides = [1, 1]} : vector<16x96xf32> to vector<8x8xf32>
    %165 = vector.extract_strided_slice %3 {offsets = [8, 88], sizes = [8, 8], strides = [1, 1]} : vector<16x96xf32> to vector<8x8xf32>
    %cst_56 = arith.constant dense<0.000000e+00> : vector<8x8xf32>
    %166 = tpu.matmul %163, %164, %cst_56 {dimension_numbers = #tpu.dot_dimension_numbers<[1], [1], [0], [0], [0, 0, 1, 0], [], []>} : vector<8x8xf32>, vector<8x8xf32>, vector<8x8xf32> -> vector<8x8xf32>
    %cst_57 = arith.constant -1.000000e+30 : f32
    %167 = vector.broadcast %cst_57 : f32 to vector<8x8xf32>
    %168 = arith.select %6, %166, %167 : vector<8x8xi1>, vector<8x8xf32>
    %cst_58 = arith.constant dense<0xFF800000> : vector<8xf32>
    %169 = vector.multi_reduction <maximumf>, %168, %cst_58 [1] : vector<8x8xf32> to vector<8xf32>
    %170 = vector.shape_cast %169 : vector<8xf32> to vector<8x1xf32>
    %171 = vector.broadcast %170 : vector<8x1xf32> to vector<8x8xf32>
    %172 = arith.subf %168, %171 : vector<8x8xf32>
    %173 = math.exp %172 : vector<8x8xf32>
    %cst_59 = arith.constant dense<0.000000e+00> : vector<8xf32>
    %174 = vector.multi_reduction <add>, %173, %cst_59 [1] : vector<8x8xf32> to vector<8xf32>
    %175 = vector.shape_cast %174 : vector<8xf32> to vector<8x1xf32>
    %176 = tpu.reciprocal %175 {approx = true} : vector<8x1xf32> -> vector<8x1xf32>
    %177 = vector.broadcast %176 : vector<8x1xf32> to vector<8x8xf32>
    %178 = arith.mulf %173, %177 : vector<8x8xf32>
    %cst_60 = arith.constant dense<0.000000e+00> : vector<8x8xf32>
    %179 = tpu.matmul %178, %165, %cst_60 {dimension_numbers = #tpu.dot_dimension_numbers<[1], [0], [0], [1], [0, 0, 1, 1], [], []>} : vector<8x8xf32>, vector<8x8xf32>, vector<8x8xf32> -> vector<8x8xf32>
    %180 = vector.extract_strided_slice %7 {offsets = [3, 0, 0], sizes = [1, 8, 32], strides = [1, 1, 1]} : vector<4x8x32xf32> to vector<1x8x32xf32>
    %181 = vector.shape_cast %180 : vector<1x8x32xf32> to vector<8x32xf32>
    %cst_61 = arith.constant dense<0.000000e+00> : vector<8x32xf32>
    %182 = tpu.matmul %179, %181, %cst_61 {dimension_numbers = #tpu.dot_dimension_numbers<[1], [0], [0], [1], [0, 0, 1, 1], [], []>} : vector<8x8xf32>, vector<8x32xf32>, vector<8x32xf32> -> vector<8x32xf32>
    %183 = arith.addf %162, %182 : vector<8x32xf32>
    %184 = vector.broadcast %8 : vector<1x32xf32> to vector<8x32xf32>
    %185 = arith.addf %183, %184 : vector<8x32xf32>
    %c1 = arith.constant 1 : index
    %c0_62 = arith.constant 0 : index
    %c0_63 = arith.constant 0 : index
    %186 = vector.load %arg5[%c1, %c0_62, %c0_63] : memref<2x8x32xf32, #tpu.memory_space<vmem>>, vector<1x8x32xf32>
    %187 = vector.shape_cast %186 : vector<1x8x32xf32> to vector<8x32xf32>
    %188 = vector.shape_cast %185 : vector<8x32xf32> to vector<1x8x32xf32>
    tpu.vector_store %arg5[%c1, %c0_62, %c0_63], %188 {strides = array<i32>} : memref<2x8x32xf32, #tpu.memory_space<vmem>>, vector<1x8x32xf32>,
    return
  }
  func.func @transform_0(%arg0: i32) -> (i32, i32, i32) {
    %c0_i32 = arith.constant 0 : i32
    %c0_i32_0 = arith.constant 0 : i32
    %c0_i32_1 = arith.constant 0 : i32
    return %arg0, %c0_i32, %c0_i32_0 : i32, i32, i32
  }
  func.func @transform_1(%arg0: i32) -> (i32, i32) {
    %c0_i32 = arith.constant 0 : i32
    %c0_i32_0 = arith.constant 0 : i32
    %c0_i32_1 = arith.constant 0 : i32
    return %c0_i32, %c0_i32_0 : i32, i32
  }
  func.func @transform_2(%arg0: i32) -> (i32, i32, i32) {
    %c0_i32 = arith.constant 0 : i32
    %c0_i32_0 = arith.constant 0 : i32
    %c0_i32_1 = arith.constant 0 : i32
    %c0_i32_2 = arith.constant 0 : i32
    return %c0_i32, %c0_i32_0, %c0_i32_1 : i32, i32, i32
  }
  func.func @transform_3(%arg0: i32) -> (i32, i32) {
    %c0_i32 = arith.constant 0 : i32
    %c0_i32_0 = arith.constant 0 : i32
    %c0_i32_1 = arith.constant 0 : i32
    return %c0_i32, %c0_i32_0 : i32, i32
  }
  func.func @transform_4(%arg0: i32) -> (i32, i32, i32) {
    %c0_i32 = arith.constant 0 : i32
    %c0_i32_0 = arith.constant 0 : i32
    %c0_i32_1 = arith.constant 0 : i32
    return %arg0, %c0_i32, %c0_i32_0 : i32, i32, i32
  }
}

</mosaic_0001>

<bundles_post_ra>
// kernel: tpu_custom_call.1
= control target key start
LH: loop header
LB: loop body
LE: loop exit
PB: predicated region body
PF: predicated region fallthrough
CT: control target
= control target key end

     0   :  { %9 = vsyncpa [#allocation3], 0  ;;  %s2805_s0 = inlined_call_operand.hbm [shape: f32[2,8,32], index: 0, kind: input, shape index: {}]   ;;  %s2806_s1 = inlined_call_operand.hbm [shape: f32[32,96], index: 1, kind: input, shape index: {}]   ;;  %s2807_s2 = inlined_call_operand.hbm [shape: f32[4,8,32], index: 2, kind: input, shape index: {}]   ;;  %s2808_s3 = inlined_call_operand.vmem [shape: f32[1,32], index: 3, kind: input, shape index: {}]   ;;  %s2809_s4 = inlined_call_operand.hbm [shape: f32[2,8,32], index: 4, kind: output, shape index: {}]  }
   0x1   :  { %10 = vsyncpa [#allocation6], 0 }
   0x2   :  { %11 = vsyncpa [#allocation4], 0  ;;  %s2474_s15 = smov [#allocation5]   ;;  %s2475_s17 = smov [#allocation2]  }
   0x3   :  { %s29_s16 = sshll.u32 %s2474_s15, 4  ;;  %s17_s18 = sshll.u32 %s2475_s17, 4  ;;  %s30_s16 = int_to_ptr.vmem [resolvable:$true] %s29_s16  ;;  %s2518_s18 = int_to_ptr.vmem [resolvable:$true] %s17_s18 }
   0x4   :  { %s2380_s21 = scalar_lea.hbm %s2806_s1, 512 }
   0x5   :  { %p2381_p0 = scmp.ne.s32.totalorder %s2806_s1, %s2380_s21  ;;  %p2384_p1 = scmp.lt.u32.totalorder %s2380_s21, %s2806_s1 }
   0x7   :  { %p2386_p2 = pnand %p2384_p1, %p2381_p0 }
   0x9   :  { %2389 = shalt.err (!%p2386_p2)
}
   0xa   :  { %s2390_s26 = scalar_lea.vmem %s30_s16, 512  ;;  %p2395_p4 = scmp.lt.s32.totalorder %s30_s16, %s30_s16 }
   0xb   :  { %p2391_p3 = scmp.ne.s32.totalorder %s30_s16, %s2390_s26  ;;  %p2396_p5 = scmp.lt.s32.totalorder %s2390_s26, %s2390_s26 }
   0xd   :  { %p2397_p6 = por %p2396_p5, %p2395_p4 }
   0xf   :  { %p2398_p7 = pnand %p2397_p6, %p2391_p3 }
  0x11   :  { %2401 = shalt.err (!%p2398_p7)
}
  0x12   :  { %s2476_s27 = smov 128   ;;  %s2477_s28 = smov 8  }
  0x13   :  { %35 = dma.hbm_to_vmem [thread:$0]  %s2806_s1, 512, %s30_s16, [#allocation6], %s2476_s27, %s2476_s27, %s2477_s28  }
  0x14   :  { %s2402_s7 = scalar_lea.hbm %s2805_s0, 256 }
  0x15   :  { %p2403_p8 = scmp.ne.s32.totalorder %s2805_s0, %s2402_s7  ;;  %p2406_p9 = scmp.lt.u32.totalorder %s2402_s7, %s2805_s0 }
  0x17   :  { %p2408_p10 = pnand %p2406_p9, %p2403_p8 }
  0x19   :  { %2411 = shalt.err (!%p2408_p10)
}
  0x1a   :  { %s2412_s12 = scalar_lea.vmem %s2518_s18, 256  ;;  %p2417_p12 = scmp.lt.s32.totalorder %s2518_s18, %s2518_s18 }
  0x1b   :  { %p2413_p11 = scmp.ne.s32.totalorder %s2518_s18, %s2412_s12  ;;  %p2418_p13 = scmp.lt.s32.totalorder %s2412_s12, %s2412_s12 }
  0x1d   :  { %p2419_p0 = por %p2418_p13, %p2417_p12 }
  0x1f   :  { %p2420_p1 = pnand %p2419_p0, %p2413_p11 }
  0x21   :  { %2423 = shalt.err (!%p2420_p1)
}
  0x22   :  { %23 = dma.hbm_to_vmem [thread:$0]  %s2805_s0, 256, %s2518_s18, [#allocation3], %s2476_s27, %s2476_s27, %s2477_s28  }
  0x23   :  { %s2478_s14 = smov [#allocation7]   ;;  %s2424_s19 = scalar_lea.hbm %s2807_s2, 512 }
  0x24   :  { %s41_s15 = sshll.u32 %s2478_s14, 4  ;;  %p2425_p2 = scmp.ne.s32.totalorder %s2807_s2, %s2424_s19  ;;  %s42_s15 = int_to_ptr.vmem [resolvable:$true] %s41_s15 }
  0x25   :  { %p2428_p3 = scmp.lt.u32.totalorder %s2424_s19, %s2807_s2 }
  0x27   :  { %p2430_p4 = pnand %p2428_p3, %p2425_p2 }
  0x29   :  { %2433 = shalt.err (!%p2430_p4)
}
  0x2a   :  { %s2434_s24 = scalar_lea.vmem %s42_s15, 512  ;;  %p2439_p6 = scmp.lt.s32.totalorder %s42_s15, %s42_s15 }
  0x2b   :  { %p2435_p5 = scmp.ne.s32.totalorder %s42_s15, %s2434_s24  ;;  %p2440_p7 = scmp.lt.s32.totalorder %s2434_s24, %s2434_s24 }
  0x2d   :  { %p2441_p8 = por %p2440_p7, %p2439_p6 }
  0x2f   :  { %p2442_p9 = pnand %p2441_p8, %p2435_p5 }
  0x31   :  { %2445 = shalt.err (!%p2442_p9)
}
  0x32   :  { %47 = dma.hbm_to_vmem [thread:$0]  %s2807_s2, 512, %s42_s15, [#allocation6], %s2476_s27, %s2476_s27, %s2477_s28  }
  0x33   :  { %2468 = dma.done.wait [#allocation3], 256  }
  0x34   :  { %2469 = vsyncadd [#allocation3], 4294967040 }
  0x35   :  { %2470 = dma.done.wait [#allocation6], 1024  }
  0x36   :  { %2471 = vsyncadd [#allocation6], 4294966272  ;;  %vm65_vm0 = vcmask 261120   ;;  %v61_v0 = vld [vmem:[#allocation5] sm:$0xff]  ;;  %v62_v1 = vld [vmem:[#allocation5 + $0x8] sm:$0xff]  ;;  %v2479_v8 = vmov 0.0   ;;  %v147_v14 = vlaneseq }
  0x37   :  { %v63_v2 = vld [vmem:[#allocation5 + $0x10] sm:$0xff]  ;;  %v2321_v3 = vpack.c.bf16 %v62_v1, %v61_v0  ;;  %v64_v4 = vld [vmem:[#allocation5 + $0x18] sm:$0xff]  ;;  %2201 = vmatprep.subr.mxu1 %v2479_v8  ;;  %vm2480_vm1 = vmmov 0   ;;  %s2481_s2 = smov 120   ;;  %s2482_s25 = smov 96   ;;  %vm160_vm2 = vcmask 64512  }
  0x38   :  { %v59_v5 = vld [vmem:[#allocation2] sm:$0xff]  ;;  %v2325_v6 = vpack.c.bf16 %v64_v4, %v63_v2  ;;  %v60_v7 = vld [vmem:[#allocation2 + $0x8] sm:$0xff]  ;;  %2203 = vmatprep.mubr.msk.f32.mxu1 %vm2480_vm1, %v2479_v8  ;;  %s2483_s26 = smov 88   ;;  %v148_v15 = vshrl.u32 %v147_v14, 7  ;;  %v150_v16 = vand.u32 127, %v147_v14  ;;  %s2484_s29 = smov 56  }
  0x39   :  { %2198 = vmatprep.mubr.msk.f32.mxu0 %vm65_vm0, %v59_v5  ;;  %2322 = vmatprep.subr.bf16.mxu0 %v2321_v3  ;;  %s2485_s30 = smov 64   ;;  %s2486_s5 = smov 80   ;;  %v2619_v36 = vld [vmem:[#allocation7 + $0x8] sm:$0xff]  ;;  %v2631_v45 = vld [vmem:[#allocation7] sm:$0xff] }
  0x3a   :  { %2324 = vmatpush3.bf16.msra.mxu0 %v2321_v3  ;;  %vm2599_vm3 = vcmp.le.s32.totalorder %v150_v16, %v148_v15  ;;  %s2487_s6 = smov 112   ;;  %s2488_s7 = smov 72  }
  0x3b   :  { %2326 = vmatprep.subr.bf16.mxu0 %v2325_v6  ;;  %s2489_s8 = smov 104   ;;  %s2490_s9 = smov 48  }
  0x3c   :  { %s2491_s10 = smov 40  }
  0x3e   :  { %2328 = vmatpush3.bf16.msra.mxu0 %v2325_v6 }
  0x3f   :  { %2211 = vmatprep.subr.mxu0 %v2479_v8 }
  0x41   :  { %2199 = vmatmul.mubr.msk.f32.vlgmr.msra.gmra.mrb[0].mxu0 %vm65_vm0, %v60_v7 }
  0x42   :  { %2213 = vmatprep.mubr.msk.f32.mxu0 %vm2480_vm1, %v2479_v8 }
 0x114   :  { %v2578_v9 = vpop.f32.mrb[0].mxu0 }
 0x115   :  { %v2580_v10 = vpop.f32.mrb[1].mxu0 }
 0x116   :  { %323 = vrot.lane.b32.xlu1 %v2580_v10, %s2481_s2  ;;  %158 = vrot.lane.b32.xlu0 %v2580_v10, %s2482_s25 }
 0x11a   :  { %325 = vrot.lane.b32.xlu0 %v2580_v10, %s2483_s26 }
 0x188   :  { %v159_v11 = vpop.permute.xlu0 %158  ;;  %v324_v13 = vpop.permute.xlu1 %323 }
 0x189   :  { %2202 = vmatpush3.xpose.msk.msra.mxu1 %vm160_vm2, %v159_v11  ;;  %v2669_v11 = vld [vmem:[#allocation7 + $0x10] sm:$0xff] }
 0x18a   :  { %2206 = vmatprep.subr.mxu1 %v2479_v8 }
 0x18c   :  { %2204 = vmatmul.mubr.msk.f32.vlgmr.msra.gmra.mrb[0].mxu1 %vm160_vm2, %v2580_v10  ;;  %v326_v12 = vpop.permute.xlu0 %325 }
 0x18d   :  { %2212 = vmatpush3.xpose.msk.msra.mxu0 %vm160_vm2, %v326_v12  ;;  %2208 = vmatprep.mubr.msk.f32.mxu1 %vm2480_vm1, %v2479_v8 }
 0x18e   :  { %2221 = vmatprep.subr.mxu0 %v2479_v8 }
 0x190   :  { %2214 = vmatmul.mubr.msk.f32.vlgmr.msra.gmra.mrb[2].mxu0 %vm160_vm2, %v324_v13 }
 0x191   :  { %2223 = vmatprep.mubr.msk.f32.mxu0 %vm2480_vm1, %v2479_v8  ;;  %2222 = vmatpush3.msra.mxu0 %v2619_v36 }
 0x192   :  { %2231 = vmatprep.subr.mxu0 %v2479_v8 }
 0x25f   :  { %v231_v18 = vpop.f32.mrb[0].mxu1 }
 0x260   :  { %v235_v19 = vsel %vm2599_vm3, %v231_v18, -1e+30  ;;  %v2205_v20 = vpop.f32.mrb[1].mxu1 }
 0x261   :  { %v236_v21 = vsel %vm160_vm2, %v235_v19, -inf }
 0x262   :  { %237 = vmax.xlane.f32.xlu1 %v236_v21 }
 0x263   :  { %v397_v22 = vpop.f32.mrb[2].mxu0 }
 0x264   :  { %v401_v23 = vsel %vm2599_vm3, %v397_v22, -1e+30  ;;  %v2215_v24 = vpop.f32.mrb[3].mxu0 }
 0x265   :  { %v402_v25 = vsel %vm160_vm2, %v401_v23, -inf }
 0x266   :  { %403 = vmax.xlane.f32.xlu0 %v402_v25 }
 0x2ef   :  { %v238_v26 = vpop.xlane.xlu1 %237 }
 0x2f0   :  { %v239_v27 = vsub.f32 %v235_v19, %v238_v26 }
 0x2f2   :  { %v240_v28 = vmul.f32 1.442695, %v239_v27 }
 0x2f3   :  { %v404_v29 = vpop.xlane.xlu0 %403 }
 0x2f4   :  { %2348 = vpow2.f32 %v240_v28  ;;  %v405_v30 = vsub.f32 %v401_v23, %v404_v29 }
 0x2f6   :  { %v406_v31 = vmul.f32 1.442695, %v405_v30 }
 0x2f8   :  { %2350 = vpow2.f32 %v406_v31 }
 0x2fe   :  { %v2349_v32 = vpop.eup %2348 }
 0x2ff   :  { %v242_v33 = vsel %vm160_vm2, %v2349_v32, 0.0 }
 0x300   :  { %243 = vadd.xlane.f32.xlu0 %v242_v33  ;;  %v2704_v33 = vld [vmem:[#allocation7 + $0x18] sm:$0xff] }
 0x302   :  { %v2351_v34 = vpop.eup %2350 }
 0x303   :  { %v408_v35 = vsel %vm160_vm2, %v2351_v34, 0.0 }
 0x304   :  { %409 = vadd.xlane.f32.xlu1 %v408_v35 }
 0x315   :  { %413 = vrot.lane.b32.xlu1 %v2580_v10, %s2484_s29 }
 0x316   :  { %247 = vrot.lane.b32.xlu0 %v2580_v10, %s2485_s30 }
 0x319   :  { %637 = vrot.lane.b32.xlu1 %v2580_v10, %s2486_s5 }
 0x31a   :  { %635 = vrot.lane.b32.xlu0 %v2580_v10, %s2487_s6 }
 0x38d   :  { %v244_v37 = vpop.xlane.xlu0 %243 }
 0x38e   :  { %2352 = vrcp.f32 %v244_v37 }
 0x391   :  { %v410_v38 = vpop.xlane.xlu1 %409  ;;  %v248_v39 = vpop.permute.xlu0 %247 }
 0x392   :  { %2354 = vrcp.f32 %v410_v38  ;;  %2207 = vmatpush3.msra.mxu1 %v248_v39 }
 0x393   :  { %2216 = vmatprep.subr.mxu1 %v2479_v8 }
 0x395   :  { %v414_v42 = vpop.permute.xlu1 %413  ;;  %v636_v51 = vpop.permute.xlu0 %635 }
 0x398   :  { %v2353_v40 = vpop.eup %2352 }
 0x399   :  { %v246_v41 = vmul.f32 %v2353_v40, %v2349_v32  ;;  %v638_v49 = vpop.permute.xlu1 %637 }
 0x39b   :  { %2209 = vmatmul.mubr.msk.f32.vlgmr.msra.gmra.mrb[2].mxu1 %vm160_vm2, %v246_v41 }
 0x39c   :  { %v2355_v43 = vpop.eup %2354  ;;  %2217 = vmatpush3.msra.mxu1 %v414_v42  ;;  %2218 = vmatprep.mubr.msk.f32.mxu1 %vm2480_vm1, %v2479_v8 }
 0x39d   :  { %v412_v44 = vmul.f32 %v2355_v43, %v2351_v34  ;;  %2226 = vmatprep.subr.mxu1 %v2479_v8 }
 0x39f   :  { %2219 = vmatmul.mubr.msk.f32.vlgmr.msra.gmra.mrb[4].mxu1 %vm160_vm2, %v412_v44 }
 0x3a0   :  { %2228 = vmatprep.mubr.msk.f32.mxu1 %vm2480_vm1, %v2479_v8  ;;  %2227 = vmatpush3.msra.mxu1 %v2631_v45 }
 0x3a1   :  { %2236 = vmatprep.subr.mxu1 %v2479_v8 }
 0x46e   :  { %v319_v46 = vpop.f32.mrb[2].mxu1 }
 0x46f   :  { %v2210_v47 = vpop.f32.mrb[3].mxu1  ;;  %2229 = vmatmul.mubr.msk.f32.vlgmr.msra.gmra.mrb[6].mxu1 %vm160_vm2, %v319_v46 }
 0x470   :  { %2238 = vmatprep.mubr.msk.f32.mxu1 %vm2480_vm1, %v2479_v8 }
 0x472   :  { %v485_v48 = vpop.f32.mrb[4].mxu1 }
 0x473   :  { %v2220_v50 = vpop.f32.mrb[5].mxu1  ;;  %2224 = vmatmul.mubr.msk.f32.vlgmr.msra.gmra.mrb[4].mxu0 %vm160_vm2, %v485_v48 }
 0x474   :  { %2232 = vmatpush3.xpose.msk.msra.mxu0 %vm160_vm2, %v638_v49  ;;  %2233 = vmatprep.mubr.msk.f32.mxu0 %vm2480_vm1, %v2479_v8 }
 0x475   :  { %2241 = vmatprep.subr.mxu0 %v2479_v8 }
 0x477   :  { %2234 = vmatmul.mubr.msk.f32.vlgmr.msra.gmra.mrb[6].mxu0 %vm160_vm2, %v636_v51 }
 0x478   :  { %2243 = vmatprep.mubr.msk.f32.mxu0 %vm2480_vm1, %v2479_v8  ;;  %2242 = vmatpush3.msra.mxu0 %v2669_v11 }
 0x479   :  { %2251 = vmatprep.subr.mxu0 %v2479_v8 }
 0x542   :  { %v631_v52 = vpop.f32.mrb[6].mxu1 }
 0x543   :  { %v2230_v53 = vpop.f32.mrb[7].mxu1 }
 0x546   :  { %v558_v54 = vpop.f32.mrb[4].mxu0 }
 0x547   :  { %v2646_v55 = vadd.f32 %v631_v52, %v558_v54  ;;  %v2225_v56 = vpop.f32.mrb[5].mxu0 }
 0x548   :  { %v2731_v56 = vld [vmem:[%s2808_s3] ss:$0 sm:$0xff]  ;;  %s2492_s3 = smov [#allocation8]  }
 0x549   :  { %s2088_s1 = sshll.u32 %s2492_s3, 4  ;;  %s2089_s1 = int_to_ptr.vmem [resolvable:$true] %s2088_s1 }
 0x54a   :  { %v709_v57 = vpop.f32.mrb[6].mxu0  ;;  %s2446_s13 = scalar_lea.vmem %s2089_s1, 256  ;;  %p2451_p11 = scmp.lt.s32.totalorder %s2089_s1, %s2089_s1 }
 0x54b   :  { %v713_v58 = vsel %vm2599_vm3, %v709_v57, -1e+30  ;;  %v2235_v59 = vpop.f32.mrb[7].mxu0  ;;  %p2447_p10 = scmp.ne.s32.totalorder %s2089_s1, %s2446_s13  ;;  %p2452_p12 = scmp.lt.s32.totalorder %s2446_s13, %s2446_s13 }
 0x54c   :  { %v714_v60 = vsel %vm160_vm2, %v713_v58, -inf }
 0x54d   :  { %715 = vmax.xlane.f32.xlu1 %v714_v60  ;;  %p2453_p13 = por %p2452_p12, %p2451_p11 }
 0x54f   :  { %p2454_p0 = pnand %p2453_p13, %p2447_p10 }
 0x55e   :  { %877 = vrot.lane.b32.xlu1 %v2580_v10, %s2488_s7 }
 0x562   :  { %875 = vrot.lane.b32.xlu1 %v2580_v10, %s2489_s8 }
 0x566   :  { %1124 = vrot.lane.b32.xlu1 %v2578_v9, %s2482_s25 }
 0x5da   :  { %v716_v61 = vpop.xlane.xlu1 %715 }
 0x5db   :  { %v717_v62 = vsub.f32 %v713_v58, %v716_v61 }
 0x5dd   :  { %v718_v63 = vmul.f32 1.442695, %v717_v62 }
 0x5de   :  { %v878_v5 = vpop.permute.xlu1 %877 }
 0x5df   :  { %2356 = vpow2.f32 %v718_v63 }
 0x5e2   :  { %v876_v7 = vpop.permute.xlu1 %875 }
 0x5e6   :  { %v1125_v27 = vpop.permute.xlu1 %1124 }
 0x5e9   :  { %v2357_v0 = vpop.eup %2356 }
 0x5ea   :  { %v720_v1 = vsel %vm160_vm2, %v2357_v0, 0.0 }
 0x5eb   :  { %721 = vadd.xlane.f32.xlu0 %v720_v1 }
 0x601   :  { %725 = vrot.lane.b32.xlu0 %v2580_v10, %s2490_s9 }
 0x678   :  { %v722_v2 = vpop.xlane.xlu0 %721 }
 0x679   :  { %2358 = vrcp.f32 %v722_v2 }
 0x67c   :  { %v726_v3 = vpop.permute.xlu0 %725 }
 0x67d   :  { %2237 = vmatpush3.msra.mxu1 %v726_v3 }
 0x67e   :  { %2246 = vmatprep.subr.mxu1 %v2479_v8 }
 0x683   :  { %v2359_v4 = vpop.eup %2358 }
 0x684   :  { %v724_v6 = vmul.f32 %v2359_v4, %v2357_v0 }
 0x686   :  { %2239 = vmatmul.mubr.msk.f32.vlgmr.msra.gmra.mrb[8].mxu1 %vm160_vm2, %v724_v6 }
 0x687   :  { %2247 = vmatpush3.xpose.msk.msra.mxu1 %vm160_vm2, %v878_v5  ;;  %2248 = vmatprep.mubr.msk.f32.mxu1 %vm2480_vm1, %v2479_v8 }
 0x688   :  { %2256 = vmatprep.subr.mxu1 %v2479_v8 }
 0x68a   :  { %2249 = vmatmul.mubr.msk.f32.vlgmr.msra.gmra.mrb[10].mxu1 %vm160_vm2, %v876_v7 }
 0x68b   :  { %2258 = vmatprep.mubr.msk.f32.mxu1 %vm2480_vm1, %v2479_v8  ;;  %2257 = vmatpush3.msra.mxu1 %v2704_v33 }
 0x68c   :  { %2266 = vmatprep.subr.mxu1 %v2479_v8 }
 0x759   :  { %v797_v12 = vpop.f32.mrb[8].mxu1 }
 0x75a   :  { %v2240_v13 = vpop.f32.mrb[9].mxu1  ;;  %2244 = vmatmul.mubr.msk.f32.vlgmr.msra.gmra.mrb[8].mxu0 %vm160_vm2, %v797_v12 }
 0x75b   :  { %2253 = vmatprep.mubr.msk.f32.mxu0 %vm2480_vm1, %v2479_v8 }
 0x75d   :  { %v949_v14 = vpop.f32.mrb[10].mxu1 }
 0x75e   :  { %v953_v15 = vsel %vm2599_vm3, %v949_v14, -1e+30  ;;  %v2250_v16 = vpop.f32.mrb[11].mxu1 }
 0x75f   :  { %v954_v18 = vsel %vm160_vm2, %v953_v15, -inf }
 0x760   :  { %955 = vmax.xlane.f32.xlu0 %v954_v18 }
 0x776   :  { %965 = vrot.lane.b32.xlu0 %v2580_v10, %s2491_s10 }
 0x77a   :  { %1290 = vrot.lane.b32.xlu0 %v2578_v9, %s2483_s26 }
 0x7ed   :  { %v956_v19 = vpop.xlane.xlu0 %955 }
 0x7ee   :  { %v957_v20 = vsub.f32 %v953_v15, %v956_v19 }
 0x7f0   :  { %v958_v21 = vmul.f32 1.442695, %v957_v20 }
 0x7f1   :  { %v966_v22 = vpop.permute.xlu0 %965 }
 0x7f2   :  { %2360 = vpow2.f32 %v958_v21  ;;  %2252 = vmatpush3.msra.mxu0 %v966_v22 }
 0x7f3   :  { %2261 = vmatprep.subr.mxu0 %v2479_v8 }
 0x7f5   :  { %v1291_v31 = vpop.permute.xlu0 %1290 }
 0x7fc   :  { %v2361_v23 = vpop.eup %2360 }
 0x7fd   :  { %v960_v24 = vsel %vm160_vm2, %v2361_v23, 0.0 }
 0x7fe   :  { %961 = vadd.xlane.f32.xlu1 %v960_v24 }
 0x80f   :  { %1288 = vrot.lane.b32.xlu1 %v2578_v9, %s2481_s2 }
 0x82d   :  { %v870_v25 = vpop.f32.mrb[8].mxu0 }
 0x82e   :  { %v874_v10 = vadd.f32 %v870_v25, %v2646_v55  ;;  %v2245_v26 = vpop.f32.mrb[9].mxu0 }
 0x88b   :  { %v962_v28 = vpop.xlane.xlu1 %961 }
 0x88c   :  { %2362 = vrcp.f32 %v962_v28 }
 0x88f   :  { %v1289_v32 = vpop.permute.xlu1 %1288 }
 0x896   :  { %v2363_v29 = vpop.eup %2362 }
 0x897   :  { %v964_v30 = vmul.f32 %v2363_v29, %v2361_v23 }
 0x899   :  { %2254 = vmatmul.mubr.msk.f32.vlgmr.msra.gmra.mrb[10].mxu0 %vm160_vm2, %v964_v30 }
 0x89a   :  { %2262 = vmatpush3.xpose.msk.msra.mxu0 %vm160_vm2, %v1125_v27  ;;  %2263 = vmatprep.mubr.msk.f32.mxu0 %vm2480_vm1, %v2479_v8 }
 0x89b   :  { %2271 = vmatprep.subr.mxu0 %v2479_v8 }
 0x89d   :  { %2264 = vmatmul.mubr.msk.f32.vlgmr.msra.gmra.mrb[12].mxu0 %vm160_vm2, %v2578_v9 }
 0x89e   :  { %2272 = vmatpush3.xpose.msk.msra.mxu0 %vm160_vm2, %v1291_v31  ;;  %2273 = vmatprep.mubr.msk.f32.mxu0 %vm2480_vm1, %v2479_v8 }
 0x89f   :  { %2281 = vmatprep.subr.mxu0 %v2479_v8 }
 0x8a1   :  { %2274 = vmatmul.mubr.msk.f32.vlgmr.msra.gmra.mrb[14].mxu0 %vm160_vm2, %v1289_v32 }
 0x8a2   :  { %2282 = vmatpush3.msra.mxu0 %v2619_v36  ;;  %2283 = vmatprep.mubr.msk.f32.mxu0 %vm2480_vm1, %v2479_v8 }
 0x8a3   :  { %2291 = vmatprep.subr.mxu0 %v2479_v8 }
 0x96c   :  { %v1037_v34 = vpop.f32.mrb[10].mxu0 }
 0x96d   :  { %v2255_v35 = vpop.f32.mrb[11].mxu0  ;;  %2259 = vmatmul.mubr.msk.f32.vlgmr.msra.gmra.mrb[12].mxu1 %vm160_vm2, %v1037_v34 }
 0x96e   :  { %2268 = vmatprep.mubr.msk.f32.mxu1 %vm2480_vm1, %v2479_v8 }
 0x970   :  { %v1196_v37 = vpop.f32.mrb[12].mxu0 }
 0x971   :  { %v1200_v36 = vsel %vm2599_vm3, %v1196_v37, -1e+30  ;;  %v2265_v38 = vpop.f32.mrb[13].mxu0 }
 0x972   :  { %v1201_v39 = vsel %vm160_vm2, %v1200_v36, -inf }
 0x973   :  { %1202 = vmax.xlane.f32.xlu0 %v1201_v39 }
 0x974   :  { %v1362_v40 = vpop.f32.mrb[14].mxu0 }
 0x975   :  { %v1366_v41 = vsel %vm2599_vm3, %v1362_v40, -1e+30  ;;  %v2275_v42 = vpop.f32.mrb[15].mxu0 }
 0x976   :  { %v1367_v43 = vsel %vm160_vm2, %v1366_v41, -inf }
 0x977   :  { %1368 = vmax.xlane.f32.xlu1 %v1367_v43 }
 0x988   :  { %1212 = vrot.lane.b32.xlu1 %v2578_v9, %s2485_s30 }
 0x98c   :  { %1602 = vrot.lane.b32.xlu1 %v2578_v9, %s2486_s5 }
 0x990   :  { %1600 = vrot.lane.b32.xlu1 %v2578_v9, %s2487_s6 }
 0xa00   :  { %v1203_v44 = vpop.xlane.xlu0 %1202 }
 0xa01   :  { %v1204_v46 = vsub.f32 %v1200_v36, %v1203_v44 }
 0xa03   :  { %v1205_v47 = vmul.f32 1.442695, %v1204_v46 }
 0xa04   :  { %v1369_v48 = vpop.xlane.xlu1 %1368 }
 0xa05   :  { %2364 = vpow2.f32 %v1205_v47  ;;  %v1370_v49 = vsub.f32 %v1366_v41, %v1369_v48 }
 0xa07   :  { %v1371_v50 = vmul.f32 1.442695, %v1370_v49 }
 0xa08   :  { %v1213_v51 = vpop.permute.xlu1 %1212 }
 0xa09   :  { %2366 = vpow2.f32 %v1371_v50  ;;  %2267 = vmatpush3.msra.mxu1 %v1213_v51 }
 0xa0a   :  { %2276 = vmatprep.subr.mxu1 %v2479_v8 }
 0xa0c   :  { %v1603_v6 = vpop.permute.xlu1 %1602 }
 0xa0f   :  { %v2365_v52 = vpop.eup %2364 }
 0xa10   :  { %v1207_v53 = vsel %vm160_vm2, %v2365_v52, 0.0 }
 0xa11   :  { %1208 = vadd.xlane.f32.xlu0 %v1207_v53 }
 0xa13   :  { %v2367_v54 = vpop.eup %2366 }
 0xa14   :  { %v1373_v55 = vsel %vm160_vm2, %v2367_v54, 0.0 }
 0xa15   :  { %1374 = vadd.xlane.f32.xlu0 %v1373_v55 }
 0xa2b   :  { %1378 = vrot.lane.b32.xlu0 %v2578_v9, %s2484_s29 }
 0xa40   :  { %v1110_v57 = vpop.f32.mrb[12].mxu1 }
 0xa41   :  { %v1114_v58 = vadd.f32 %v1110_v57, %v874_v10  ;;  %v2260_v59 = vpop.f32.mrb[13].mxu1 }
 0xa43   :  { %v1121_v60 = vadd.f32 %v2731_v56, %v1114_v58 }
 0xa45   :  { %1122 = vst.msk [vmem:[#allocation8] sm:$0xff] %vm65_vm0, %v1121_v60 }
 0xa9e   :  { %v1209_v61 = vpop.xlane.xlu0 %1208 }
 0xa9f   :  { %2368 = vrcp.f32 %v1209_v61 }
 0xaa2   :  { %v1375_v62 = vpop.xlane.xlu0 %1374 }
 0xaa3   :  { %2370 = vrcp.f32 %v1375_v62 }
 0xaa6   :  { %v1379_v1 = vpop.permute.xlu0 %1378 }
 0xaa9   :  { %v2369_v63 = vpop.eup %2368 }
 0xaaa   :  { %v1211_v0 = vmul.f32 %v2369_v63, %v2365_v52 }
 0xaac   :  { %2269 = vmatmul.mubr.msk.f32.vlgmr.msra.gmra.mrb[14].mxu1 %vm160_vm2, %v1211_v0 }
 0xaad   :  { %v2371_v2 = vpop.eup %2370  ;;  %2277 = vmatpush3.msra.mxu1 %v1379_v1  ;;  %2278 = vmatprep.mubr.msk.f32.mxu1 %vm2480_vm1, %v2479_v8 }
 0xaae   :  { %v1377_v3 = vmul.f32 %v2371_v2, %v2367_v54  ;;  %2286 = vmatprep.subr.mxu1 %v2479_v8 }
 0xab0   :  { %2279 = vmatmul.mubr.msk.f32.vlgmr.msra.gmra.mrb[16].mxu1 %vm160_vm2, %v1377_v3 }
 0xab1   :  { %2287 = vmatpush3.msra.mxu1 %v2631_v45  ;;  %2288 = vmatprep.mubr.msk.f32.mxu1 %vm2480_vm1, %v2479_v8  ;;  %v1601_v45 = vpop.permute.xlu1 %1600 }
 0xab2   :  { %2296 = vmatprep.subr.mxu1 %v2479_v8 }
 0xb7f   :  { %v1284_v4 = vpop.f32.mrb[14].mxu1 }
 0xb80   :  { %v2270_v5 = vpop.f32.mrb[15].mxu1  ;;  %2289 = vmatmul.mubr.msk.f32.vlgmr.msra.gmra.mrb[18].mxu1 %vm160_vm2, %v1284_v4 }
 0xb81   :  { %2298 = vmatprep.mubr.msk.f32.mxu1 %vm2480_vm1, %v2479_v8 }
 0xb83   :  { %v1450_v7 = vpop.f32.mrb[16].mxu1 }
 0xb84   :  { %v2280_v12 = vpop.f32.mrb[17].mxu1  ;;  %2284 = vmatmul.mubr.msk.f32.vlgmr.msra.gmra.mrb[16].mxu0 %vm160_vm2, %v1450_v7 }
 0xb85   :  { %2292 = vmatpush3.xpose.msk.msra.mxu0 %vm160_vm2, %v1603_v6  ;;  %2293 = vmatprep.mubr.msk.f32.mxu0 %vm2480_vm1, %v2479_v8 }
 0xb86   :  { %2301 = vmatprep.subr.mxu0 %v2479_v8 }
 0xb88   :  { %2294 = vmatmul.mubr.msk.f32.vlgmr.msra.gmra.mrb[18].mxu0 %vm160_vm2, %v1601_v45 }
 0xb89   :  { %2302 = vmatpush3.msra.mxu0 %v2669_v11  ;;  %2303 = vmatprep.mubr.msk.f32.mxu0 %vm2480_vm1, %v2479_v8 }
 0xb8a   :  { %2311 = vmatprep.subr.mxu0 %v2479_v8 }
 0xc53   :  { %v1596_v13 = vpop.f32.mrb[18].mxu1 }
 0xc54   :  { %v2290_v14 = vpop.f32.mrb[19].mxu1 }
 0xc57   :  { %v1523_v15 = vpop.f32.mrb[16].mxu0 }
 0xc58   :  { %v1597_v16 = vadd.f32 %v1596_v13, %v1523_v15  ;;  %v2285_v18 = vpop.f32.mrb[17].mxu0 }
 0xc5b   :  { %v1674_v19 = vpop.f32.mrb[18].mxu0 }
 0xc5c   :  { %v1678_v20 = vsel %vm2599_vm3, %v1674_v19, -1e+30  ;;  %v2295_v21 = vpop.f32.mrb[19].mxu0 }
 0xc5d   :  { %v1679_v22 = vsel %vm160_vm2, %v1678_v20, -inf }
 0xc5e   :  { %1680 = vmax.xlane.f32.xlu0 %v1679_v22 }
 0xc74   :  { %1690 = vrot.lane.b32.xlu0 %v2578_v9, %s2490_s9 }
 0xc78   :  { %1840 = vrot.lane.b32.xlu0 %v2578_v9, %s2489_s8 }
 0xceb   :  { %v1681_v11 = vpop.xlane.xlu0 %1680 }
 0xcec   :  { %v1682_v23 = vsub.f32 %v1678_v20, %v1681_v11 }
 0xcee   :  { %v1683_v24 = vmul.f32 1.442695, %v1682_v23 }
 0xcef   :  { %v1691_v25 = vpop.permute.xlu0 %1690 }
 0xcf0   :  { %2372 = vpow2.f32 %v1683_v24  ;;  %2297 = vmatpush3.msra.mxu1 %v1691_v25 }
 0xcf1   :  { %2306 = vmatprep.subr.mxu1 %v2479_v8 }
 0xcf3   :  { %v1841_v31 = vpop.permute.xlu0 %1840 }
 0xcfa   :  { %v2373_v10 = vpop.eup %2372 }
 0xcfb   :  { %v1685_v26 = vsel %vm160_vm2, %v2373_v10, 0.0 }
 0xcfc   :  { %1686 = vadd.xlane.f32.xlu1 %v1685_v26 }
 0xd0d   :  { %1842 = vrot.lane.b32.xlu1 %v2578_v9, %s2488_s7 }
 0xd89   :  { %v1687_v27 = vpop.xlane.xlu1 %1686 }
 0xd8a   :  { %2374 = vrcp.f32 %v1687_v27 }
 0xd8d   :  { %v1843_v30 = vpop.permute.xlu1 %1842 }
 0xd94   :  { %v2375_v28 = vpop.eup %2374 }
 0xd95   :  { %v1689_v29 = vmul.f32 %v2375_v28, %v2373_v10 }
 0xd97   :  { %2299 = vmatmul.mubr.msk.f32.vlgmr.msra.gmra.mrb[20].mxu1 %vm160_vm2, %v1689_v29 }
 0xd98   :  { %2307 = vmatpush3.xpose.msk.msra.mxu1 %vm160_vm2, %v1843_v30  ;;  %2308 = vmatprep.mubr.msk.f32.mxu1 %vm2480_vm1, %v2479_v8 }
 0xd99   :  { %2316 = vmatprep.subr.mxu1 %v2479_v8 }
 0xd9b   :  { %2309 = vmatmul.mubr.msk.f32.vlgmr.msra.gmra.mrb[22].mxu1 %vm160_vm2, %v1841_v31 }
 0xd9c   :  { %2317 = vmatpush3.msra.mxu1 %v2704_v33  ;;  %2318 = vmatprep.mubr.msk.f32.mxu1 %vm2480_vm1, %v2479_v8 }
 0xe6a   :  { %v1762_v32 = vpop.f32.mrb[20].mxu1 }
 0xe6b   :  { %v2300_v34 = vpop.f32.mrb[21].mxu1  ;;  %2304 = vmatmul.mubr.msk.f32.vlgmr.msra.gmra.mrb[20].mxu0 %vm160_vm2, %v1762_v32 }
 0xe6c   :  { %2313 = vmatprep.mubr.msk.f32.mxu0 %vm2480_vm1, %v2479_v8 }
 0xe6e   :  { %v1914_v35 = vpop.f32.mrb[22].mxu1 }
 0xe6f   :  { %v1918_v37 = vsel %vm2599_vm3, %v1914_v35, -1e+30  ;;  %v2310_v36 = vpop.f32.mrb[23].mxu1 }
 0xe70   :  { %v1919_v38 = vsel %vm160_vm2, %v1918_v37, -inf }
 0xe71   :  { %1920 = vmax.xlane.f32.xlu1 %v1919_v38 }
 0xefe   :  { %v1921_v39 = vpop.xlane.xlu1 %1920 }
 0xeff   :  { %v1922_v33 = vsub.f32 %v1918_v37, %v1921_v39 }
 0xf01   :  { %v1923_v40 = vmul.f32 1.442695, %v1922_v33 }
 0xf03   :  { %2376 = vpow2.f32 %v1923_v40 }
 0xf0d   :  { %v2377_v41 = vpop.eup %2376 }
 0xf0e   :  { %v1925_v42 = vsel %vm160_vm2, %v2377_v41, 0.0 }
 0xf0f   :  { %1926 = vadd.xlane.f32.xlu0 %v1925_v42 }
 0xf25   :  { %1930 = vrot.lane.b32.xlu0 %v2578_v9, %s2491_s10 }
 0xf3e   :  { %v1835_v8 = vpop.f32.mrb[20].mxu0 }
 0xf3f   :  { %v1839_v43 = vadd.f32 %v1835_v8, %v1597_v16  ;;  %v2305_v44 = vpop.f32.mrb[21].mxu0 }
 0xf9c   :  { %v1927_v17 = vpop.xlane.xlu0 %1926 }
 0xf9d   :  { %2378 = vrcp.f32 %v1927_v17 }
 0xfa0   :  { %v1931_v46 = vpop.permute.xlu0 %1930 }
 0xfa1   :  { %2312 = vmatpush3.msra.mxu0 %v1931_v46 }
 0xfa7   :  { %v2379_v47 = vpop.eup %2378 }
 0xfa8   :  { %v1929_v48 = vmul.f32 %v2379_v47, %v2377_v41 }
 0xfaa   :  { %2314 = vmatmul.mubr.msk.f32.vlgmr.msra.gmra.mrb[22].mxu0 %vm160_vm2, %v1929_v48 }
0x107d   :  { %v2002_v49 = vpop.f32.mrb[22].mxu0 }
0x107e   :  { %v2315_v50 = vpop.f32.mrb[23].mxu0  ;;  %2319 = vmatmul.mubr.msk.f32.vlgmr.msra.gmra.mrb[24].mxu1 %vm160_vm2, %v2002_v49 }
0x1151   :  { %v2075_v51 = vpop.f32.mrb[24].mxu1 }
0x1152   :  { %v2079_v52 = vadd.f32 %v2075_v51, %v1839_v43  ;;  %v2320_v9 = vpop.f32.mrb[25].mxu1 }
0x1154   :  { %v2080_v53 = vadd.f32 %v2731_v56, %v2079_v52 }
0x1156   :  { %2082 = vst.msk [vmem:[#allocation8 + $0x8] sm:$0xff] %vm65_vm0, %v2080_v53 }
0x1157   :  { %2457 = shalt.err (!%p2454_p0)
}
0x1158   :  { %s2458_s16 = scalar_lea.hbm %s2809_s4, 256 }
0x1159   :  { %p2459_p1 = scmp.ne.s32.totalorder %s2809_s4, %s2458_s16  ;;  %p2462_p2 = scmp.lt.u32.totalorder %s2458_s16, %s2809_s4 }
0x115b   :  { %p2464_p3 = pnand %p2462_p2, %p2459_p1 }
0x115d   :  { %2467 = shalt.err (!%p2464_p3)
}
0x115e   :  { %2094 = dma.vmem_to_hbm [thread:$0]  %s2089_s1, 256, %s2809_s4, [#allocation4], %s2476_s27, %s2476_s27, %s2477_s28  }
0x115f   :  { %2472 = dma.done.wait [#allocation4], 256  }
0x1160   :  { %2473 = vsyncadd [#allocation4], 4294967040 }
0x1161   :  { %2098 = vsyncpa [#allocation3], 1 }
0x1162   :  { %2099 = vsyncpa [#allocation6], 1 }
0x1163   :  { %2100 = vsyncpa [#allocation4], 1 }

</bundles_post_ra>
